<compile_context>
chip_gen: v7x
topology: tpu7x:2x2x1
jax: 0.10.0
libtpu: 0.0.40
codegen_flags: <defaults>
</compile_context>

<pallas_src>
import functools
import math

import jax
import jax.numpy as jnp
from jax.experimental import pallas as pl
from jax.experimental.pallas import tpu as pltpu

_NEG_BIG = -1e30                      # stand-in for -inf used by masked_fill_
_CLAMP_LO = 1e-10
_CLAMP_HI = 1e10
_LOG_CLAMP_LO = math.log(_CLAMP_LO)   # floor for the fused log-softmax


# ---------------------------------------------------------------------------
# Kernel: one row-block of the (rows x cols) contrastive-loss numerator.
# ---------------------------------------------------------------------------
def _scl_kernel(x1_ref, x2n_ref, lab_col_ref, lab_row_ref, out_ref, *,
                inv_temperature, exclude_diag):
    """Per-row numerator  sum_j log_softmax(logits)[i, j] * mid[i, j].

    x1_ref:      (tq, Dp)  f32   row block of inrep_1 (D zero-padded)
    x2n_ref:     (B,  Dp)  bf16  pre-L2-normalised inrep_2 (grid-resident)
    lab_col_ref: (tq, 1)   i32   row-side labels of this block
    lab_row_ref: (1,  B)   i32   column-side labels (grid-resident)
    out_ref:     (tq, 1)   f32   per-row numerator (divide / mean done outside)
    """
    x1 = x1_ref[...]                                            # (tq, Dp)

    # 1/||row||: one EUP rsqrt per row; zero-padded lanes contribute nothing.
    inv1 = jax.lax.rsqrt(jnp.sum(x1 * x1, axis=1, keepdims=True) + 1e-24)

    # bf16 MXU operands, contraction on the last dim of BOTH sides (no x2.T
    # relayout), f32 accumulation.
    raw = jax.lax.dot_general(
        x1.astype(jnp.bfloat16), x2n_ref[...],
        dimension_numbers=(((1,), (1,)), ((), ())),
        preferred_element_type=jnp.float32)                     # (tq, B)

    # fold the x1-row normalisation and 1/temperature into one scale
    logits = raw * (inv1 * inv_temperature)

    tq, b = raw.shape
    ci = jax.lax.broadcasted_iota(jnp.int32, (tq, b), 1)        # column index
    same = lab_col_ref[...] == lab_row_ref[...]                 # (tq, b) bool

    if exclude_diag:
        # absolute row index enters through a cheap (tq, 1) column broadcast
        ri = (pl.program_id(0) * tq
              + jax.lax.broadcasted_iota(jnp.int32, (tq, 1), 0))
        eye = ci == ri
        # masked_fill_(diag, -inf); the reference's diag subtraction is dead.
        logits = jnp.where(eye, _NEG_BIG, logits)
        same = jnp.logical_and(same, jnp.logical_not(eye))

    # fused log-softmax with the reference clamp floor (the 1e10 upper clamp
    # is inert since softmax <= 1; the diagonal "+1" term is killed by mid==0).
    m = jnp.max(logits, axis=1, keepdims=True)
    lse = m + jnp.log(jnp.sum(jnp.exp(logits - m), axis=1, keepdims=True))
    log_p = jnp.maximum(logits - lse, _LOG_CLAMP_LO)

    mid = same.astype(jnp.float32)
    out_ref[...] = jnp.sum(log_p * mid, axis=1, keepdims=True)  # (tq, 1)


# ---------------------------------------------------------------------------
# Generation-aware sizing helpers
# ---------------------------------------------------------------------------
def _round_up(x, m):
    return ((x + m - 1) // m) * m


def _tpu_vmem_capacity_bytes():
    try:
        return int(pltpu.get_tpu_info().vmem_capacity_bytes)
    except Exception:
        try:
            kind = jax.devices()[0].device_kind.lower()
        except Exception:
            kind = ""
        return (64 << 20) if ("v7" in kind or "7x" in kind) else (128 << 20)


def _mxu_row_multiple():
    try:
        kind = jax.devices()[0].device_kind.lower()
    except Exception:
        kind = ""
    # v6e / v7x: 2x256^2 MXU; v4 / v5e: 128x128
    return 256 if ("v6" in kind or "v7" in kind or "7x" in kind) else 128


def _pick_block_rows(B, n_cols, temp_budget_bytes, mxu_rows):
    """Row-tile size: bounded by the VMEM budget for the live (tq, n_cols) f32
    temporaries, forced to >= 2 grid blocks when B >= 16 (keeps both v7x
    TensorCores busy), rounded to an MXU-friendly multiple."""
    # ~6 live (tq, n_cols) f32 tiles (logits, exp, p, log_p, mid, iota)
    bytes_per_row = 6 * 4 * max(n_cols, 128)
    tq = max(8, temp_budget_bytes // bytes_per_row)
    tq = min(tq, 512)                      # diminishing returns past 512 rows
    if B >= 16:
        tq = min(tq, -(-B // 2))           # guarantee at least two blocks
    tq = min(tq, _round_up(B, 8))
    if tq >= mxu_rows:
        tq = (tq // mxu_rows) * mxu_rows
    elif tq >= 128:
        tq = (tq // 128) * 128
    else:
        tq = max(8, (tq // 8) * 8)
    return tq


def _vmem_budgets(n_cols, d_pad):
    cap = _tpu_vmem_capacity_bytes()
    usable = int(cap * 0.75)                      # leave compiler headroom
    resident = n_cols * d_pad * 2                 # pre-normalised bf16 x2 (x1 buf)
    resident += 8 * _round_up(n_cols, 128) * 4    # (1, n_cols) label row
    # streamed per-block operands at the largest tq we would pick (512),
    # double-buffered: x1 block + label column + output block (lane-padded)
    streamed = 2 * (512 * d_pad * 4 + 2 * 512 * 128 * 4)
    temp_budget = usable - resident - streamed - (2 << 20)
    return usable, max(temp_budget, 4 << 20)


def _vmem_limit_bytes(tq, n_cols, d_pad, usable):
    est = n_cols * d_pad * 2                      # resident bf16 x2
    est += 8 * _round_up(n_cols, 128) * 4         # resident label row
    est += 2 * tq * d_pad * 4                     # x1 blocks (double-buffered)
    est += 4 * tq * 128 * 4                       # label-col + output blocks
    est += 8 * tq * max(n_cols, 128) * 4          # (tq, n_cols) f32 temporaries
    est += 2 << 20                                # slack
    return int(min(max(est, 16 << 20), usable))


# ---------------------------------------------------------------------------
# Wrapper: row-tiled grid, resident pre-normalised x2, reduction outside.
# ---------------------------------------------------------------------------
def _run_kernel(x1, x2, lab_col, lab_row, counts, temperature, exclude_diag):
    B, D = x1.shape
    n_cols = x2.shape[0]

    # ---- hoisted pre-processing (done ONCE, not once per grid block) -------
    d_pad = _round_up(max(D, 128), 128)
    x2n = x2 * jax.lax.rsqrt(jnp.sum(x2 * x2, axis=1, keepdims=True) + 1e-24)
    x2n = jnp.pad(x2n, ((0, 0), (0, d_pad - D))).astype(jnp.bfloat16)
    x1p = jnp.pad(x1, ((0, 0), (0, d_pad - D)))

    usable, temp_budget = _vmem_budgets(n_cols, d_pad)
    tq = _pick_block_rows(B, n_cols, temp_budget, _mxu_row_multiple())
    b_pad = _round_up(B, tq)
    nblocks = b_pad // tq

    if b_pad != B:
        # padded rows produce harmless values that are sliced off below
        x1p = jnp.pad(x1p, ((0, b_pad - B), (0, 0)))
        lab_col = jnp.pad(lab_col, (0, b_pad - B))
    labc = lab_col.reshape(b_pad, 1).astype(jnp.int32)
    labr = lab_row.reshape(1, n_cols).astype(jnp.int32)

    kernel = functools.partial(_scl_kernel,
                               inv_temperature=float(1.0 / temperature),
                               exclude_diag=exclude_diag)
    vmem_limit = _vmem_limit_bytes(tq, n_cols, d_pad, usable)

    def _call(single_buffer_residents):
        def resident(shape):
            if single_buffer_residents:
                return pl.BlockSpec(shape, lambda i: (0, 0),
                                    pipeline_mode=pl.Buffered(1))
            return pl.BlockSpec(shape, lambda i: (0, 0))

        return pl.pallas_call(
            kernel,
            out_shape=jax.ShapeDtypeStruct((b_pad, 1), jnp.float32),
            grid_spec=pltpu.PrefetchScalarGridSpec(
                num_scalar_prefetch=0,
                grid=(nblocks,),
                in_specs=[
                    pl.BlockSpec((tq, d_pad), lambda i: (i, 0)),   # x1 rows
                    resident((n_cols, d_pad)),                     # x2 (bf16)
                    pl.BlockSpec((tq, 1), lambda i: (i, 0)),       # row labels
                    resident((1, n_cols)),                         # col labels
                ],
                out_specs=pl.BlockSpec((tq, 1), lambda i: (i, 0)),
            ),
            compiler_params=pltpu.CompilerParams(
                dimension_semantics=("parallel",),
                vmem_limit_bytes=vmem_limit,
            ),
        )(x1p, x2n, labc, labr)

    try:
        num = _call(True)
    except Exception:
        # TODO(synk): pl.Buffered(1) rejected by this backend; fall back to the
        # default double-buffering of the grid-invariant operands.
        num = _call(False)

    # exact per-row denominator + batch mean outside the kernel (O(B) work)
    loss_rows = num[:B, 0] / (counts + 1e-10)
    return -(jnp.sum(loss_rows) / B)


def scl_forward(inrep_1, inrep_2, label_1, label_2=None, temperature=0.1):
    """Faithful port of SCL.forward (the .cuda() device moves are no-ops)."""
    inrep_1 = jnp.asarray(inrep_1, jnp.float32)
    inrep_2 = jnp.asarray(inrep_2, jnp.float32)
    label_1 = jnp.asarray(label_1, jnp.int32)

    bs_1 = int(inrep_1.shape[0])
    bs_2 = int(inrep_2.shape[0])

    if label_2 is None:
        if bs_1 == 1:
            # torch returns -mean(zeros(1)) == -0.0
            return -jnp.mean(jnp.zeros((1,), jnp.float32))
        # per-row positive count: same label, self excluded
        counts = (jnp.sum(label_1[:, None] == label_1[None, :],
                          axis=1).astype(jnp.float32) - 1.0)
        return _run_kernel(inrep_1, inrep_2, label_1, label_1, counts,
                           temperature, exclude_diag=True)

    # label_2 provided: batch-size reconciliation glue of the reference.
    label_2 = jnp.asarray(label_2, jnp.int32)
    if bs_1 != bs_2:
        if bs_1 < bs_2:
            inrep_2 = inrep_2[:bs_1]
            label_2 = label_2[:bs_1]
        else:
            # TODO(synk): the PyTorch original pads one random row at a time
            # with Python random.randint (nondeterministic); we draw all pad
            # indices at once from a fixed seed and gather in one shot.
            idx = jax.random.randint(jax.random.PRNGKey(0), (bs_1 - bs_2,),
                                     0, bs_2)
            inrep_2 = jnp.concatenate([inrep_2, inrep_2[idx]], axis=0)
            label_2 = jnp.concatenate([label_2, label_2[idx]], axis=0)

    # mid[i, j] = (label_2[i] == label_1[j])  (label_1_mat.t().eq(label_2_mat))
    counts = jnp.sum(label_2[:, None] == label_1[None, :],
                     axis=1).astype(jnp.float32)
    return _run_kernel(inrep_1, inrep_2, label_2, label_1, counts,
                       temperature, exclude_diag=False)


# ---------------------------------------------------------------------------
# Pure-JAX reference (mirrors the PyTorch math, full f32) for a sanity check.
# ---------------------------------------------------------------------------
def _ref_self(x1, x2, lab, temperature):
    n1 = x1 / jnp.maximum(jnp.linalg.norm(x1, axis=1, keepdims=True), 1e-12)
    n2 = x2 / jnp.maximum(jnp.linalg.norm(x2, axis=1, keepdims=True), 1e-12)
    cos = n1 @ n2.T
    B = cos.shape[0]
    eye = jnp.eye(B, dtype=jnp.float32)
    cos = (cos - jnp.diag(jnp.diag(cos))) / temperature
    cos = jnp.where(eye.astype(bool), -jnp.inf, cos)
    p = jax.nn.softmax(cos, axis=1) + eye
    log_p = jnp.log(jnp.clip(p, _CLAMP_LO, _CLAMP_HI))
    mid = (lab[:, None] == lab[None, :]).astype(jnp.float32) - eye
    loss = jnp.sum(log_p * mid, axis=1) / (jnp.sum(mid, axis=1) + 1e-10)
    return -jnp.mean(loss)


def _ref_cross(x1, x2, lab1, lab2, temperature):
    n1 = x1 / jnp.maximum(jnp.linalg.norm(x1, axis=1, keepdims=True), 1e-12)
    n2 = x2 / jnp.maximum(jnp.linalg.norm(x2, axis=1, keepdims=True), 1e-12)
    cos = (n1 @ n2.T) / temperature
    p = jax.nn.softmax(cos, axis=1)
    log_p = jnp.log(jnp.clip(p, _CLAMP_LO, _CLAMP_HI))
    mid = (lab2[:, None] == lab1[None, :]).astype(jnp.float32)
    loss = jnp.sum(log_p * mid, axis=1) / (jnp.sum(mid, axis=1) + 1e-10)
    return -jnp.mean(loss)


if __name__ == "__main__":
    key = jax.random.PRNGKey(0)
    k1, k2, k3, k4, k5, k6, k7 = jax.random.split(key, 7)

    # Tolerance accounts for the bf16 MXU operands.
    tol = dict(rtol=2e-2, atol=2e-2)

    # --- Branch 1: label_2 is None (SupCon, diagonal excluded), B=8, D=32 ---
    B, D = 8, 32
    inrep_1 = jax.random.normal(k1, (B, D), jnp.float32)
    inrep_2 = jax.random.normal(k2, (B, D), jnp.float32)
    label_1 = jax.random.randint(k3, (B,), 0, 3, jnp.int32)
    label_2 = jax.random.randint(k4, (B,), 0, 3, jnp.int32)

    loss_self = jax.block_until_ready(
        scl_forward(inrep_1, inrep_2, label_1, None, temperature=0.1))
    ref_self = _ref_self(inrep_1, inrep_2, label_1, 0.1)
    assert jnp.allclose(loss_self, ref_self, **tol), (loss_self, ref_self)

    # --- Branch 2: label_2 provided (cross-view) ----------------------------
    loss_cross = jax.block_until_ready(
        scl_forward(inrep_1, inrep_2, label_1, label_2, temperature=0.1))
    ref_cross = _ref_cross(inrep_1, inrep_2, label_1, label_2, 0.1)
    assert jnp.allclose(loss_cross, ref_cross, **tol), (loss_cross, ref_cross)

    # --- Branch 1 at B=20 (non power of two): exercises row padding, the
    #     multi-block grid and the absolute-row eye mask. ---------------------
    B2 = 20
    inrep_1b = jax.random.normal(k5, (B2, D), jnp.float32)
    inrep_2b = jax.random.normal(k6, (B2, D), jnp.float32)
    label_1b = jax.random.randint(k7, (B2,), 0, 4, jnp.int32)

    loss_self_b = jax.block_until_ready(
        scl_forward(inrep_1b, inrep_2b, label_1b, None, temperature=0.1))
    ref_self_b = _ref_self(inrep_1b, inrep_2b, label_1b, 0.1)
    assert jnp.allclose(loss_self_b, ref_self_b, **tol), (loss_self_b, ref_self_b)

    print("KERNEL_OK")
</pallas_src>

<mosaic_0001>
module attributes {stable_mosaic.version = 11 : i64} {
  func.func @_scl_kernel(%arg0: i32, %arg1: memref<8x128xf32, #tpu.memory_space<vmem>>, %arg2: memref<8x128xbf16, #tpu.memory_space<vmem>>, %arg3: memref<8x1xi32, #tpu.memory_space<vmem>>, %arg4: memref<1x8xi32, #tpu.memory_space<vmem>>, %arg5: memref<8x1xf32, #tpu.memory_space<vmem>>) attributes {dimension_semantics = [#tpu.dimension_semantics<parallel>], iteration_bounds = array<i64: 1>, scalar_prefetch = 0 : i64, scratch_operands = 0 : i64, tpu.core_type = #tpu.core_type<tc>, window_params = [{transform_indices = @transform_0, window_bounds = array<i64: 8, 128>}, {pipeline_mode = #tpu.pipeline_mode<synchronous>, transform_indices = @transform_1, window_bounds = array<i64: 8, 128>}, {transform_indices = @transform_2, window_bounds = array<i64: 8, 1>}, {pipeline_mode = #tpu.pipeline_mode<synchronous>, transform_indices = @transform_3, window_bounds = array<i64: 1, 8>}, {transform_indices = @transform_4, window_bounds = array<i64: 8, 1>}]} {
    %c0 = arith.constant 0 : index
    %c0_0 = arith.constant 0 : index
    %0 = vector.load %arg1[%c0, %c0_0] : memref<8x128xf32, #tpu.memory_space<vmem>>, vector<8x128xf32>
    %1 = arith.mulf %0, %0 : vector<8x128xf32>
    %cst = arith.constant dense<0.000000e+00> : vector<8xf32>
    %2 = vector.multi_reduction <add>, %1, %cst [1] : vector<8x128xf32> to vector<8xf32>
    %3 = vector.shape_cast %2 : vector<8xf32> to vector<8x1xf32>
    %cst_1 = arith.constant 1.000000e-24 : f32
    %4 = vector.broadcast %cst_1 : f32 to vector<8x1xf32>
    %5 = arith.addf %3, %4 : vector<8x1xf32>
    %6 = math.rsqrt %5 : vector<8x1xf32>
    %7 = arith.truncf %0 : vector<8x128xf32> to vector<8x128xbf16>
    %c0_2 = arith.constant 0 : index
    %c0_3 = arith.constant 0 : index
    %8 = vector.load %arg2[%c0_2, %c0_3] : memref<8x128xbf16, #tpu.memory_space<vmem>>, vector<8x128xbf16>
    %cst_4 = arith.constant dense<0.000000e+00> : vector<8x8xf32>
    %9 = tpu.matmul %7, %8, %cst_4 {dimension_numbers = #tpu.dot_dimension_numbers<[1], [1], [0], [0], [0, 0, 1, 0], [], []>} : vector<8x128xbf16>, vector<8x128xbf16>, vector<8x8xf32> -> vector<8x8xf32>
    %cst_5 = arith.constant 1.000000e+01 : f32
    %10 = vector.broadcast %cst_5 : f32 to vector<8x1xf32>
    %11 = arith.mulf %6, %10 : vector<8x1xf32>
    %12 = vector.broadcast %11 : vector<8x1xf32> to vector<8x8xf32>
    %13 = arith.mulf %9, %12 : vector<8x8xf32>
    %14 = tpu.iota {dimensions = array<i32: 1>} : vector<8x8xi32>
    %c0_6 = arith.constant 0 : index
    %c0_7 = arith.constant 0 : index
    %15 = vector.load %arg3[%c0_6, %c0_7] : memref<8x1xi32, #tpu.memory_space<vmem>>, vector<8x1xi32>
    %c0_8 = arith.constant 0 : index
    %c0_9 = arith.constant 0 : index
    %16 = vector.load %arg4[%c0_8, %c0_9] : memref<1x8xi32, #tpu.memory_space<vmem>>, vector<1x8xi32>
    %17 = vector.broadcast %15 : vector<8x1xi32> to vector<8x8xi32>
    %18 = vector.broadcast %16 : vector<1x8xi32> to vector<8x8xi32>
    %19 = arith.cmpi eq, %17, %18 : vector<8x8xi32>
    %c8_i32 = arith.constant 8 : i32
    %20 = arith.muli %arg0, %c8_i32 : i32
    %21 = tpu.iota {dimensions = array<i32: 0>} : vector<8x1xi32>
    %22 = vector.broadcast %20 : i32 to vector<8x1xi32>
    %23 = arith.addi %22, %21 : vector<8x1xi32>
    %24 = vector.broadcast %23 : vector<8x1xi32> to vector<8x8xi32>
    %25 = arith.cmpi eq, %14, %24 : vector<8x8xi32>
    %cst_10 = arith.constant -1.000000e+30 : f32
    %26 = vector.broadcast %cst_10 : f32 to vector<8x8xf32>
    %27 = arith.select %25, %26, %13 : vector<8x8xi1>, vector<8x8xf32>
    %cst_11 = arith.constant dense<true> : vector<8x8xi1>
    %28 = arith.xori %25, %cst_11 : vector<8x8xi1>
    %29 = arith.andi %19, %28 : vector<8x8xi1>
    %cst_12 = arith.constant dense<0xFF800000> : vector<8xf32>
    %30 = vector.multi_reduction <maximumf>, %27, %cst_12 [1] : vector<8x8xf32> to vector<8xf32>
    %31 = vector.shape_cast %30 : vector<8xf32> to vector<8x1xf32>
    %32 = vector.broadcast %31 : vector<8x1xf32> to vector<8x8xf32>
    %33 = arith.subf %27, %32 : vector<8x8xf32>
    %34 = math.exp %33 : vector<8x8xf32>
    %cst_13 = arith.constant dense<0.000000e+00> : vector<8xf32>
    %35 = vector.multi_reduction <add>, %34, %cst_13 [1] : vector<8x8xf32> to vector<8xf32>
    %36 = vector.shape_cast %35 : vector<8xf32> to vector<8x1xf32>
    %37 = math.log %36 : vector<8x1xf32>
    %38 = arith.addf %31, %37 : vector<8x1xf32>
    %39 = vector.broadcast %38 : vector<8x1xf32> to vector<8x8xf32>
    %40 = arith.subf %27, %39 : vector<8x8xf32>
    %cst_14 = arith.constant -23.0258503 : f32
    %41 = vector.broadcast %cst_14 : f32 to vector<8x8xf32>
    %42 = arith.maximumf %40, %41 : vector<8x8xf32>
    %43 = arith.extui %29 : vector<8x8xi1> to vector<8x8xi32>
    %44 = arith.sitofp %43 : vector<8x8xi32> to vector<8x8xf32>
    %45 = arith.mulf %42, %44 : vector<8x8xf32>
    %cst_15 = arith.constant dense<0.000000e+00> : vector<8xf32>
    %46 = vector.multi_reduction <add>, %45, %cst_15 [1] : vector<8x8xf32> to vector<8xf32>
    %47 = vector.shape_cast %46 : vector<8xf32> to vector<8x1xf32>
    %c0_16 = arith.constant 0 : index
    %c0_17 = arith.constant 0 : index
    %48 = vector.load %arg5[%c0_16, %c0_17] : memref<8x1xf32, #tpu.memory_space<vmem>>, vector<8x1xf32>
    tpu.vector_store %arg5[%c0_16, %c0_17], %47 {strides = array<i32>} : memref<8x1xf32, #tpu.memory_space<vmem>>, vector<8x1xf32>,
    return
  }
  func.func @transform_0(%arg0: i32) -> (i32, i32) {
    %c0_i32 = arith.constant 0 : i32
    %c0_i32_0 = arith.constant 0 : i32
    return %arg0, %c0_i32 : i32, i32
  }
  func.func @transform_1(%arg0: i32) -> (i32, i32) {
    %c0_i32 = arith.constant 0 : i32
    %c0_i32_0 = arith.constant 0 : i32
    %c0_i32_1 = arith.constant 0 : i32
    return %c0_i32, %c0_i32_0 : i32, i32
  }
  func.func @transform_2(%arg0: i32) -> (i32, i32) {
    %c0_i32 = arith.constant 0 : i32
    %c0_i32_0 = arith.constant 0 : i32
    return %arg0, %c0_i32 : i32, i32
  }
  func.func @transform_3(%arg0: i32) -> (i32, i32) {
    %c0_i32 = arith.constant 0 : i32
    %c0_i32_0 = arith.constant 0 : i32
    %c0_i32_1 = arith.constant 0 : i32
    return %c0_i32, %c0_i32_0 : i32, i32
  }
  func.func @transform_4(%arg0: i32) -> (i32, i32) {
    %c0_i32 = arith.constant 0 : i32
    %c0_i32_0 = arith.constant 0 : i32
    return %arg0, %c0_i32 : i32, i32
  }
}

module attributes {stable_mosaic.version = 11 : i64} {
  func.func @_scl_kernel(%arg0: i32, %arg1: memref<8x128xf32, #tpu.memory_space<vmem>>, %arg2: memref<8x128xbf16, #tpu.memory_space<vmem>>, %arg3: memref<8x1xi32, #tpu.memory_space<vmem>>, %arg4: memref<1x8xi32, #tpu.memory_space<vmem>>, %arg5: memref<8x1xf32, #tpu.memory_space<vmem>>) attributes {dimension_semantics = [#tpu.dimension_semantics<parallel>], iteration_bounds = array<i64: 1>, scalar_prefetch = 0 : i64, scratch_operands = 0 : i64, tpu.core_type = #tpu.core_type<tc>, window_params = [{transform_indices = @transform_0, window_bounds = array<i64: 8, 128>}, {pipeline_mode = #tpu.pipeline_mode<synchronous>, transform_indices = @transform_1, window_bounds = array<i64: 8, 128>}, {transform_indices = @transform_2, window_bounds = array<i64: 8, 1>}, {pipeline_mode = #tpu.pipeline_mode<synchronous>, transform_indices = @transform_3, window_bounds = array<i64: 1, 8>}, {transform_indices = @transform_4, window_bounds = array<i64: 8, 1>}]} {
    %c0 = arith.constant 0 : index
    %c0_0 = arith.constant 0 : index
    %0 = vector.load %arg1[%c0, %c0_0] : memref<8x128xf32, #tpu.memory_space<vmem>>, vector<8x128xf32>
    %1 = arith.mulf %0, %0 : vector<8x128xf32>
    %cst = arith.constant dense<0.000000e+00> : vector<8xf32>
    %2 = vector.multi_reduction <add>, %1, %cst [1] : vector<8x128xf32> to vector<8xf32>
    %3 = vector.shape_cast %2 : vector<8xf32> to vector<8x1xf32>
    %cst_1 = arith.constant 1.000000e-24 : f32
    %4 = vector.broadcast %cst_1 : f32 to vector<8x1xf32>
    %5 = arith.addf %3, %4 : vector<8x1xf32>
    %6 = math.rsqrt %5 : vector<8x1xf32>
    %7 = arith.truncf %0 : vector<8x128xf32> to vector<8x128xbf16>
    %c0_2 = arith.constant 0 : index
    %c0_3 = arith.constant 0 : index
    %8 = vector.load %arg2[%c0_2, %c0_3] : memref<8x128xbf16, #tpu.memory_space<vmem>>, vector<8x128xbf16>
    %cst_4 = arith.constant dense<0.000000e+00> : vector<8x8xf32>
    %9 = tpu.matmul %7, %8, %cst_4 {dimension_numbers = #tpu.dot_dimension_numbers<[1], [1], [0], [0], [0, 0, 1, 0], [], []>} : vector<8x128xbf16>, vector<8x128xbf16>, vector<8x8xf32> -> vector<8x8xf32>
    %cst_5 = arith.constant 1.000000e+01 : f32
    %10 = vector.broadcast %cst_5 : f32 to vector<8x1xf32>
    %11 = arith.mulf %6, %10 : vector<8x1xf32>
    %12 = vector.broadcast %11 : vector<8x1xf32> to vector<8x8xf32>
    %13 = arith.mulf %9, %12 : vector<8x8xf32>
    %14 = tpu.iota {dimensions = array<i32: 1>} : vector<8x8xi32>
    %c0_6 = arith.constant 0 : index
    %c0_7 = arith.constant 0 : index
    %15 = vector.load %arg3[%c0_6, %c0_7] : memref<8x1xi32, #tpu.memory_space<vmem>>, vector<8x1xi32>
    %c0_8 = arith.constant 0 : index
    %c0_9 = arith.constant 0 : index
    %16 = vector.load %arg4[%c0_8, %c0_9] : memref<1x8xi32, #tpu.memory_space<vmem>>, vector<1x8xi32>
    %17 = vector.broadcast %15 : vector<8x1xi32> to vector<8x8xi32>
    %18 = vector.broadcast %16 : vector<1x8xi32> to vector<8x8xi32>
    %19 = arith.cmpi eq, %17, %18 : vector<8x8xi32>
    %c8_i32 = arith.constant 8 : i32
    %20 = arith.muli %arg0, %c8_i32 : i32
    %21 = tpu.iota {dimensions = array<i32: 0>} : vector<8x1xi32>
    %22 = vector.broadcast %20 : i32 to vector<8x1xi32>
    %23 = arith.addi %22, %21 : vector<8x1xi32>
    %24 = vector.broadcast %23 : vector<8x1xi32> to vector<8x8xi32>
    %25 = arith.cmpi eq, %14, %24 : vector<8x8xi32>
    %cst_10 = arith.constant -1.000000e+30 : f32
    %26 = vector.broadcast %cst_10 : f32 to vector<8x8xf32>
    %27 = arith.select %25, %26, %13 : vector<8x8xi1>, vector<8x8xf32>
    %cst_11 = arith.constant dense<true> : vector<8x8xi1>
    %28 = arith.xori %25, %cst_11 : vector<8x8xi1>
    %29 = arith.andi %19, %28 : vector<8x8xi1>
    %cst_12 = arith.constant dense<0xFF800000> : vector<8xf32>
    %30 = vector.multi_reduction <maximumf>, %27, %cst_12 [1] : vector<8x8xf32> to vector<8xf32>
    %31 = vector.shape_cast %30 : vector<8xf32> to vector<8x1xf32>
    %32 = vector.broadcast %31 : vector<8x1xf32> to vector<8x8xf32>
    %33 = arith.subf %27, %32 : vector<8x8xf32>
    %34 = math.exp %33 : vector<8x8xf32>
    %cst_13 = arith.constant dense<0.000000e+00> : vector<8xf32>
    %35 = vector.multi_reduction <add>, %34, %cst_13 [1] : vector<8x8xf32> to vector<8xf32>
    %36 = vector.shape_cast %35 : vector<8xf32> to vector<8x1xf32>
    %37 = math.log %36 : vector<8x1xf32>
    %38 = arith.addf %31, %37 : vector<8x1xf32>
    %39 = vector.broadcast %38 : vector<8x1xf32> to vector<8x8xf32>
    %40 = arith.subf %27, %39 : vector<8x8xf32>
    %cst_14 = arith.constant -23.0258503 : f32
    %41 = vector.broadcast %cst_14 : f32 to vector<8x8xf32>
    %42 = arith.maximumf %40, %41 : vector<8x8xf32>
    %43 = arith.extui %29 : vector<8x8xi1> to vector<8x8xi32>
    %44 = arith.sitofp %43 : vector<8x8xi32> to vector<8x8xf32>
    %45 = arith.mulf %42, %44 : vector<8x8xf32>
    %cst_15 = arith.constant dense<0.000000e+00> : vector<8xf32>
    %46 = vector.multi_reduction <add>, %45, %cst_15 [1] : vector<8x8xf32> to vector<8xf32>
    %47 = vector.shape_cast %46 : vector<8xf32> to vector<8x1xf32>
    %c0_16 = arith.constant 0 : index
    %c0_17 = arith.constant 0 : index
    %48 = vector.load %arg5[%c0_16, %c0_17] : memref<8x1xf32, #tpu.memory_space<vmem>>, vector<8x1xf32>
    tpu.vector_store %arg5[%c0_16, %c0_17], %47 {strides = array<i32>} : memref<8x1xf32, #tpu.memory_space<vmem>>, vector<8x1xf32>,
    return
  }
  func.func @transform_0(%arg0: i32) -> (i32, i32) {
    %c0_i32 = arith.constant 0 : i32
    %c0_i32_0 = arith.constant 0 : i32
    return %arg0, %c0_i32 : i32, i32
  }
  func.func @transform_1(%arg0: i32) -> (i32, i32) {
    %c0_i32 = arith.constant 0 : i32
    %c0_i32_0 = arith.constant 0 : i32
    %c0_i32_1 = arith.constant 0 : i32
    return %c0_i32, %c0_i32_0 : i32, i32
  }
  func.func @transform_2(%arg0: i32) -> (i32, i32) {
    %c0_i32 = arith.constant 0 : i32
    %c0_i32_0 = arith.constant 0 : i32
    return %arg0, %c0_i32 : i32, i32
  }
  func.func @transform_3(%arg0: i32) -> (i32, i32) {
    %c0_i32 = arith.constant 0 : i32
    %c0_i32_0 = arith.constant 0 : i32
    %c0_i32_1 = arith.constant 0 : i32
    return %c0_i32, %c0_i32_0 : i32, i32
  }
  func.func @transform_4(%arg0: i32) -> (i32, i32) {
    %c0_i32 = arith.constant 0 : i32
    %c0_i32_0 = arith.constant 0 : i32
    return %arg0, %c0_i32 : i32, i32
  }
}

</mosaic_0001>

<bundles_post_ra>
// kernel: tpu_custom_call.1
= control target key start
LH: loop header
LB: loop body
LE: loop exit
PB: predicated region body
PF: predicated region fallthrough
CT: control target
= control target key end

     0   :  { %v138_v0 = vmov 0.0   ;;  %vm139_vm0 = vmmov 0   ;;  %v68_v7 = vlaneseq  ;;  %vm89_vm2 = vcmask 64512   ;;  %s187_s1 = inlined_call_operand.vmem [shape: bf16[8,128], index: 1, kind: input, shape index: {}]   ;;  %s188_s0 = inlined_call_operand.vmem [shape: f32[8,128], index: 0, kind: input, shape index: {}]   ;;  %s189_s2 = inlined_call_operand.vmem [shape: s32[8,1], index: 2, kind: input, shape index: {}]   ;;  %s190_s3 = inlined_call_operand.vmem [shape: s32[1,8], index: 3, kind: input, shape index: {}]   ;;  %s191_s4 = inlined_call_operand.vmem [shape: f32[8,1], index: 4, kind: output, shape index: {}]  }
   0x1   :  { %120 = vmatprep.subr.bf16.mxu0 %v138_v0  ;;  %v25_v1 = vld [vmem:[%s187_s1] sm:$0xf]  ;;  %122 = vmatprep.mubr.msk.bf16.mxu0 %vm139_vm0, %v138_v0  ;;  %v140_v19 = vmov 0   ;;  %vm141_vm3 = vmmov 1   ;;  %vm110_vm7 = vcmask 7168  }
   0x2   :  { %v18_v2 = vld [vmem:[%s188_s0] sm:$0xff]  ;;  %121 = vmatpush3.bf16.xpose.msra.mxu0 %v25_v1  ;;  %v69_v9 = vand.u32 127, %v68_v7  ;;  %v82_v10 = vshrl.u32 %v68_v7, 7  ;;  %130 = vset.pattern.permute.xlu1 %v140_v19 }
   0x3   :  { %v19_v3 = vmul.f32 %v18_v2, %v18_v2  ;;  %v24_v4 = vpack.c.bf16 %v18_v2, %v18_v2  ;;  %131 = vset.pattern.permute.xlu0 %v140_v19  ;;  %v70_v25 = vld [vmem:[%s189_s2] sm:$0xff] }
   0x4   :  { %vm85_vm1 = vcmp.eq.s32.totalorder %v69_v9, %v82_v10  ;;  %v116_v27 = vld [vmem:[%s190_s3] ss:$0 sm:$0xff] }
   0x5   :  { %20 = vadd.xlane.f32.xlu0 %v19_v3  ;;  %vm87_vm4 = vmxor %vm85_vm1, %vm141_vm3 }
   0x9   :  { %123 = vmatmul.mubr.bf16.vlgmr.msra.gmra.mrb[0].mxu0 %v24_v4 }
  0x92   :  { %v21_v5 = vpop.xlane.xlu0 %20 }
  0x93   :  { %v22_v6 = vadd.f32 1e-24, %v21_v5 }
  0x95   :  { %132 = vrsqrt.f32 %v22_v6 }
  0x9f   :  { %v133_v8 = vpop.eup %132 }
  0xa0   :  { %v66_v11 = vmul.f32 10.0, %v133_v8 }
  0xdc   :  { %v60_v12 = vpop.f32.mrb[0].mxu0 }
  0xdd   :  { %v67_v13 = vmul.f32 %v66_v11, %v60_v12  ;;  %v124_v14 = vpop.f32.mrb[1].mxu0 }
  0xde   :  { %v63_v15 = vpop.f32.mrb[2].mxu0 }
  0xdf   :  { %v86_v16 = vsel %vm85_vm1, -1e+30, %v67_v13  ;;  %v125_v17 = vpop.f32.mrb[3].mxu0 }
  0xe0   :  { %v90_v18 = vsel %vm89_vm2, %v86_v16, -inf }
  0xe1   :  { %91 = vmax.xlane.f32.xlu0 %v90_v18 }
 0x16e   :  { %v92_v20 = vpop.xlane.xlu0 %91 }
 0x16f   :  { %v93_v21 = vsub.f32 %v86_v16, %v92_v20 }
 0x171   :  { %v94_v22 = vmul.f32 1.442695, %v93_v21 }
 0x173   :  { %134 = vpow2.f32 %v94_v22 }
 0x17d   :  { %v135_v23 = vpop.eup %134 }
 0x17e   :  { %v96_v24 = vsel %vm89_vm2, %v135_v23, 0.0 }
 0x17f   :  { %97 = vadd.xlane.f32.xlu1 %v96_v24 }
 0x190   :  { %73 = vperm.xlu1 %130, %v70_v25  }
 0x20c   :  { %v98_v26 = vpop.xlane.xlu1 %97 }
 0x20d   :  { %136 = vlog2.f32 %v98_v26 }
 0x210   :  { %v74_v28 = vpop.permute.xlu1 %73 }
 0x211   :  { %vm79_vm5 = vcmp.eq.s32.totalorder %v74_v28, %v116_v27 }
 0x212   :  { %vm88_vm6 = vmand %vm79_vm5, %vm87_vm4 }
 0x213   :  { %v117_v33 = vsel %vm88_vm6, 1.0, %v138_v0 }
 0x217   :  { %v137_v29 = vpop.eup %136 }
 0x218   :  { %v100_v30 = vmul.f32 0.6931472, %v137_v29 }
 0x21a   :  { %v101_v31 = vadd.f32 %v100_v30, %v92_v20 }
 0x21c   :  { %v102_v32 = vsub.f32 %v86_v16, %v101_v31 }
 0x21e   :  { %v103_v34 = vmax.f32 %v102_v32, -23.02585 }
 0x220   :  { %v106_v35 = vmul.f32 %v117_v33, %v103_v34 }
 0x222   :  { %v107_v36 = vsel %vm89_vm2, %v106_v35, 0.0 }
 0x223   :  { %108 = vadd.xlane.f32.xlu0 %v107_v36 }
 0x2b0   :  { %v109_v37 = vpop.xlane.xlu0 %108 }
 0x2b1   :  { %111 = vst.msk [vmem:[%s191_s4] sm:$0xff] %vm110_vm7, %v109_v37 }

// kernel: tpu_custom_call.1
= control target key start
LH: loop header
LB: loop body
LE: loop exit
PB: predicated region body
PF: predicated region fallthrough
CT: control target
= control target key end

     0   :  { %v138_v0 = vmov 0.0   ;;  %vm139_vm0 = vmmov 0   ;;  %v68_v7 = vlaneseq  ;;  %vm89_vm2 = vcmask 64512   ;;  %s187_s1 = inlined_call_operand.vmem [shape: bf16[8,128], index: 1, kind: input, shape index: {}]   ;;  %s188_s0 = inlined_call_operand.vmem [shape: f32[8,128], index: 0, kind: input, shape index: {}]   ;;  %s189_s2 = inlined_call_operand.vmem [shape: s32[8,1], index: 2, kind: input, shape index: {}]   ;;  %s190_s3 = inlined_call_operand.vmem [shape: s32[1,8], index: 3, kind: input, shape index: {}]   ;;  %s191_s4 = inlined_call_operand.vmem [shape: f32[8,1], index: 4, kind: output, shape index: {}]  }
   0x1   :  { %120 = vmatprep.subr.bf16.mxu0 %v138_v0  ;;  %v25_v1 = vld [vmem:[%s187_s1] sm:$0xf]  ;;  %122 = vmatprep.mubr.msk.bf16.mxu0 %vm139_vm0, %v138_v0  ;;  %v140_v19 = vmov 0   ;;  %vm141_vm3 = vmmov 1   ;;  %vm110_vm7 = vcmask 7168  }
   0x2   :  { %v18_v2 = vld [vmem:[%s188_s0] sm:$0xff]  ;;  %121 = vmatpush3.bf16.xpose.msra.mxu0 %v25_v1  ;;  %v69_v9 = vand.u32 127, %v68_v7  ;;  %v82_v10 = vshrl.u32 %v68_v7, 7  ;;  %130 = vset.pattern.permute.xlu1 %v140_v19 }
   0x3   :  { %v19_v3 = vmul.f32 %v18_v2, %v18_v2  ;;  %v24_v4 = vpack.c.bf16 %v18_v2, %v18_v2  ;;  %131 = vset.pattern.permute.xlu0 %v140_v19  ;;  %v70_v25 = vld [vmem:[%s189_s2] sm:$0xff] }
   0x4   :  { %vm85_vm1 = vcmp.eq.s32.totalorder %v69_v9, %v82_v10  ;;  %v116_v27 = vld [vmem:[%s190_s3] ss:$0 sm:$0xff] }
   0x5   :  { %20 = vadd.xlane.f32.xlu0 %v19_v3  ;;  %vm87_vm4 = vmxor %vm85_vm1, %vm141_vm3 }
   0x9   :  { %123 = vmatmul.mubr.bf16.vlgmr.msra.gmra.mrb[0].mxu0 %v24_v4 }
  0x92   :  { %v21_v5 = vpop.xlane.xlu0 %20 }
  0x93   :  { %v22_v6 = vadd.f32 1e-24, %v21_v5 }
  0x95   :  { %132 = vrsqrt.f32 %v22_v6 }
  0x9f   :  { %v133_v8 = vpop.eup %132 }
  0xa0   :  { %v66_v11 = vmul.f32 10.0, %v133_v8 }
  0xdc   :  { %v60_v12 = vpop.f32.mrb[0].mxu0 }
  0xdd   :  { %v67_v13 = vmul.f32 %v66_v11, %v60_v12  ;;  %v124_v14 = vpop.f32.mrb[1].mxu0 }
  0xde   :  { %v63_v15 = vpop.f32.mrb[2].mxu0 }
  0xdf   :  { %v86_v16 = vsel %vm85_vm1, -1e+30, %v67_v13  ;;  %v125_v17 = vpop.f32.mrb[3].mxu0 }
  0xe0   :  { %v90_v18 = vsel %vm89_vm2, %v86_v16, -inf }
  0xe1   :  { %91 = vmax.xlane.f32.xlu0 %v90_v18 }
 0x16e   :  { %v92_v20 = vpop.xlane.xlu0 %91 }
 0x16f   :  { %v93_v21 = vsub.f32 %v86_v16, %v92_v20 }
 0x171   :  { %v94_v22 = vmul.f32 1.442695, %v93_v21 }
 0x173   :  { %134 = vpow2.f32 %v94_v22 }
 0x17d   :  { %v135_v23 = vpop.eup %134 }
 0x17e   :  { %v96_v24 = vsel %vm89_vm2, %v135_v23, 0.0 }
 0x17f   :  { %97 = vadd.xlane.f32.xlu1 %v96_v24 }
 0x190   :  { %73 = vperm.xlu1 %130, %v70_v25  }
 0x20c   :  { %v98_v26 = vpop.xlane.xlu1 %97 }
 0x20d   :  { %136 = vlog2.f32 %v98_v26 }
 0x210   :  { %v74_v28 = vpop.permute.xlu1 %73 }
 0x211   :  { %vm79_vm5 = vcmp.eq.s32.totalorder %v74_v28, %v116_v27 }
 0x212   :  { %vm88_vm6 = vmand %vm79_vm5, %vm87_vm4 }
 0x213   :  { %v117_v33 = vsel %vm88_vm6, 1.0, %v138_v0 }
 0x217   :  { %v137_v29 = vpop.eup %136 }
 0x218   :  { %v100_v30 = vmul.f32 0.6931472, %v137_v29 }
 0x21a   :  { %v101_v31 = vadd.f32 %v100_v30, %v92_v20 }
 0x21c   :  { %v102_v32 = vsub.f32 %v86_v16, %v101_v31 }
 0x21e   :  { %v103_v34 = vmax.f32 %v102_v32, -23.02585 }
 0x220   :  { %v106_v35 = vmul.f32 %v117_v33, %v103_v34 }
 0x222   :  { %v107_v36 = vsel %vm89_vm2, %v106_v35, 0.0 }
 0x223   :  { %108 = vadd.xlane.f32.xlu0 %v107_v36 }
 0x2b0   :  { %v109_v37 = vpop.xlane.xlu0 %108 }
 0x2b1   :  { %111 = vst.msk [vmem:[%s191_s4] sm:$0xff] %vm110_vm7, %v109_v37 }

</bundles_post_ra>
